<compile_context>
chip_gen: v5e
topology: v5e:2x2
jax: 0.10.0
libtpu: 0.0.40
codegen_flags: <defaults>
</compile_context>

<pallas_src>
import functools
import math

import jax
import jax.numpy as jnp
from jax.experimental import pallas as pl
from jax.experimental.pallas import tpu as pltpu

# --------------------------- small synthetic ZAGCNN config ---------------------------
B = 2                 # batch
L = 8                 # max sequence length
VOCAB = 64            # len(vocab)
E_DIM = 32            # config.ZAGCNN.text_embed_dim
N_KERNEL = 32         # config.ZAGCNN.num_kernels (Conv1d out channels)
KERNEL_SIZE = 3       # config.ZAGCNN.kernel_size (odd -> 'same' length)
LABEL_EMBED = 16      # config.ZAGCNN.label_embed_dim = gcn_in_features
GCN_HIDDEN = 24       # config.ZAGCNN.gcn_hidden_features
GCN_OUT = 16          # config.ZAGCNN.gcn_out_features
F_DIM = LABEL_EMBED + GCN_OUT   # text_out_transform out_features

N_LABEL = 10          # len(label)  (label nodes)
START = 5             # len(hier2label) + 1  (hierarchy nodes come first in G.x)
N_TOTAL = START + N_LABEL
NP = 128              # label axis padded to one full lane width (lane-dense everywhere)

assert KERNEL_SIZE % 2 == 1, "conv 'same' padding assumes an odd kernel size"


# ================================ fused text-path kernel ================================

def zagcnn_text_kernel(ids_ref, embed_ref, wconv_ref, bconv_ref, lab_ref,
                       wl_ref, bl_ref, wt_ref, bt_ref, agf_ref, o_ref, *, n_labels):
    """Fused: embed gather -> Conv1d(+ReLU) -> label-wise attention -> Linear+ReLU -> head.

    ids:   (ks*B*L, 1) i32  per-tap shifted token ids (id == VOCAB => zero 'same' padding)
    embed: (VOCAB, E) f32   wconv: (ks*E, K) bf16     bconv: (1, K) f32
    lab:   (D, NP)  f32     (label embeddings, transposed + lane-padded)
    wl: (K, D) bf16  bl: (1, D) f32   wt: (F, K) bf16  bt: (F, 1) f32
    agf:   (F, NP)  f32     (all_graph_feat, transposed + zero lane-padded)
    o:     (B, NP)  f32     (lane-dense; wrapper slices back to N_LABEL)
    """
    ks = KERNEL_SIZE
    nb, npad = o_ref.shape
    rows = ids_ref.shape[0] // ks          # B*L (batch folded into the matmul M dim)
    seq = rows // nb                       # L
    vocab, e_dim = embed_ref.shape

    # ---- hoisted loads / casts (single grid step; nothing re-emitted per batch item) ----
    embed_bf = embed_ref[...].astype(jnp.bfloat16)
    wconv = wconv_ref[...]
    bconv = bconv_ref[...]
    wl, bl_b = wl_ref[...], bl_ref[...]
    wt, bt = wt_ref[...], bt_ref[...]
    lab_bf = lab_ref[...].astype(jnp.bfloat16)            # (D, NP)
    agf = agf_ref[...]                                     # (F, NP), stays f32 (VPU)
    lane = jax.lax.broadcasted_iota(jnp.int32, (1, npad), 1)
    mask_bias = jnp.where(lane < n_labels, 0.0, -1e30)    # additive label mask, one row

    # ---- embedding gather as one one-hot matmul (all taps & batch items stacked) ----
    oh = (jax.lax.broadcasted_iota(jnp.int32, (ks * rows, vocab), 1)
          == ids_ref[...]).astype(jnp.bfloat16)            # sentinel id => all-zero row
    emb_all = jnp.dot(oh, embed_bf, preferred_element_type=jnp.float32)   # (ks*B*L, E)

    # ---- Conv1d ('same', zero pad) + ReLU: per-tap matmuls on the stacked batch ----
    tf = bconv
    for dt in range(ks):
        e_dt = emb_all[dt * rows:(dt + 1) * rows].astype(jnp.bfloat16)    # (B*L, E)
        tf = tf + jnp.dot(e_dt, wconv[dt * e_dim:(dt + 1) * e_dim, :],
                          preferred_element_type=jnp.float32)
    tf = jnp.maximum(tf, 0.0)                                             # (B*L, K)

    # ---- Label_wise_attention: labels live on the lane axis ----
    w_att = jnp.tanh(jnp.dot(tf.astype(jnp.bfloat16), wl,
                             preferred_element_type=jnp.float32) + bl_b)  # (B*L, D)
    scores = jnp.dot(w_att.astype(jnp.bfloat16), lab_bf,
                     preferred_element_type=jnp.float32) + mask_bias      # (B*L, NP)
    scores = scores - jnp.max(scores, axis=-1, keepdims=True)             # lane reduce
    ex = jnp.exp(scores)
    sm = ex * pl.reciprocal(jnp.sum(ex, axis=-1, keepdims=True), approx=True)

    # per-batch attention contraction over the sequence axis, stacked along lanes
    attn_blocks = []
    for bi in range(nb):
        tf_b = tf[bi * seq:(bi + 1) * seq].astype(jnp.bfloat16)           # (L, K)
        sm_b = sm[bi * seq:(bi + 1) * seq].astype(jnp.bfloat16)           # (L, NP)
        attn_blocks.append(jax.lax.dot_general(
            tf_b, sm_b, (((0,), (0,)), ((), ())),
            preferred_element_type=jnp.float32))                          # (K, NP)
    attn = jnp.concatenate(attn_blocks, axis=-1).astype(jnp.bfloat16)     # (K, B*NP)

    # ---- text_out_transform (Linear + ReLU) on the stacked tile + elementwise head ----
    t = jnp.maximum(jnp.dot(wt, attn, preferred_element_type=jnp.float32) + bt,
                    0.0)                                                  # (F, B*NP)
    for bi in range(nb):                                                  # direct row stores
        o_ref[bi:bi + 1, :] = jnp.sum(t[:, bi * npad:(bi + 1) * npad] * agf,
                                      axis=0, keepdims=True)


# ============================= GCN graph branch (plain JAX) ============================
# TODO(synk): torch_geometric GCNConv (degree normalization + gather/scatter message
# passing) has no clean Pallas fit at this tiny graph size; kept as dense plain-JAX glue.

def gcn_norm_dense(edge_index, edge_weight, num_nodes):
    src, dst = edge_index[0], edge_index[1]
    loop = jnp.arange(num_nodes, dtype=src.dtype)
    src = jnp.concatenate([src, loop])                 # add self loops (weight 1)
    dst = jnp.concatenate([dst, loop])
    w = jnp.concatenate([edge_weight, jnp.ones((num_nodes,), edge_weight.dtype)])
    deg = jnp.zeros((num_nodes,), jnp.float32).at[dst].add(w)
    dinv = jnp.where(deg > 0, jax.lax.rsqrt(deg), 0.0)
    norm = dinv[src] * w * dinv[dst]
    return jnp.zeros((num_nodes, num_nodes), jnp.float32).at[dst, src].add(norm)


def graph_branch(params, graph):
    x, edge_index, edge_weight = graph
    A = gcn_norm_dense(edge_index, edge_weight, x.shape[0])
    init_feat = x[START:]                               # initial_graph_feat = G.x[start:]
    g = params["gcn"]
    h = jnp.maximum(A @ (x @ g["w1"]) + g["b1"], 0.0)   # GCNConv1 + ReLU (dropout: identity)
    h = jnp.maximum(A @ (h @ g["w2"]) + g["b2"], 0.0)   # GCNConv2 + ReLU
    graph_feat = h[START:]                              # GCN returns the label-node rows
    all_graph_feat = jnp.concatenate([init_feat, graph_feat], axis=-1)   # (N, F)
    return init_feat, all_graph_feat


# ==================================== ZAGCNN forward ===================================

def zagcnn_forward(params, ids, mask, graph):
    del mask  # unused by ZAGCNN.forward (as is `target`); dropouts are eval-mode identity

    init_feat, agf = graph_branch(params, graph)
    # labels on the lane axis, zero-padded to a full 128-lane vreg
    lab_t = jnp.zeros((LABEL_EMBED, NP), jnp.float32).at[:, :N_LABEL].set(init_feat.T)
    agf_t = jnp.zeros((F_DIM, NP), jnp.float32).at[:, :N_LABEL].set(agf.T)

    # per-tap shifted token ids for the in-kernel one-hot gather ('same' conv padding):
    # out-of-range positions get the sentinel id VOCAB -> all-zero one-hot row.
    ids_f = ids.reshape(B * L).astype(jnp.int32)
    pos = jnp.arange(B * L, dtype=jnp.int32) % L
    pad = KERNEL_SIZE // 2
    taps = []
    for dt in range(KERNEL_SIZE):
        off = dt - pad
        valid = (pos + off >= 0) & (pos + off <= L - 1)
        taps.append(jnp.where(valid, jnp.roll(ids_f, -off), VOCAB))
    ids_taps = jnp.concatenate(taps).reshape(KERNEL_SIZE * B * L, 1)

    # gridless single invocation: every operand fully resident in VMEM, no pipelining.
    logits_pad = pl.pallas_call(
        functools.partial(zagcnn_text_kernel, n_labels=N_LABEL),
        out_shape=jax.ShapeDtypeStruct((B, NP), jnp.float32),
        in_specs=[pl.BlockSpec(memory_space=pltpu.MemorySpace.VMEM)] * 10,
        out_specs=pl.BlockSpec(memory_space=pltpu.MemorySpace.VMEM),
    )(ids_taps, params["embed"], params["conv_w"], params["conv_b"], lab_t,
      params["lwa_w"], params["lwa_b"], params["tot_w"], params["tot_b"], agf_t)

    return logits_pad[:, :N_LABEL]                                       # (B, N_LABEL)


# ================================ pure-JAX reference ===================================

def _bdot(a, b):
    return jnp.dot(a.astype(jnp.bfloat16), b.astype(jnp.bfloat16),
                   preferred_element_type=jnp.float32)


def ref_forward(params, ids, mask, graph):
    del mask
    init_feat, agf = graph_branch(params, graph)
    emb = jnp.take(params["embed"], ids, axis=0)
    pad = KERNEL_SIZE // 2
    xp = jnp.pad(emb, ((0, 0), (pad, pad), (0, 0)))
    cols = jnp.concatenate([xp[:, dt:dt + L, :] for dt in range(KERNEL_SIZE)], axis=-1)

    tf = jnp.maximum(_bdot(cols, params["conv_w"]) + params["conv_b"], 0.0)   # (B, L, K)
    w = jnp.tanh(_bdot(tf, params["lwa_w"]) + params["lwa_b"])                # (B, L, D)
    scores = jnp.einsum("nd,bld->bnl", init_feat.astype(jnp.bfloat16),
                        w.astype(jnp.bfloat16),
                        preferred_element_type=jnp.float32)                   # (B, N, L)
    sm = jax.nn.softmax(scores, axis=1)                                       # over labels
    attn = jnp.einsum("bnl,blk->bnk", sm.astype(jnp.bfloat16),
                      tf.astype(jnp.bfloat16),
                      preferred_element_type=jnp.float32)                     # (B, N, K)
    t = jnp.maximum(jnp.einsum("bnk,fk->bnf", attn.astype(jnp.bfloat16),
                               params["tot_w"],
                               preferred_element_type=jnp.float32)
                    + params["tot_b"].reshape(-1), 0.0)                       # (B, N, F)
    return jnp.sum(t * agf[None], axis=-1)                                    # (B, N)


# ============================ deterministic params / inputs ============================

def init_params(key):
    keys = iter(jax.random.split(key, 12))
    nxt = lambda: next(keys)
    dense = lambda shape, fan_in: jax.random.normal(nxt(), shape, jnp.float32) / math.sqrt(fan_in)

    p = {}
    p["embed"] = jax.random.normal(nxt(), (VOCAB, E_DIM), jnp.float32) * 0.1

    # Conv1d weight (torch layout (K, E, ks)) pre-transposed/reshaped once to the
    # im2col layout (ks*E, K) and pre-cast to bf16 for the MXU; biases pre-reshaped.
    w_conv = dense((N_KERNEL, E_DIM, KERNEL_SIZE), E_DIM * KERNEL_SIZE)
    p["conv_w"] = jnp.transpose(w_conv, (2, 1, 0)).reshape(
        KERNEL_SIZE * E_DIM, N_KERNEL).astype(jnp.bfloat16)
    p["conv_b"] = 0.1 * jax.random.normal(nxt(), (1, N_KERNEL), jnp.float32)

    p["lwa_w"] = dense((N_KERNEL, LABEL_EMBED), N_KERNEL).astype(jnp.bfloat16)
    p["lwa_b"] = 0.1 * jax.random.normal(nxt(), (1, LABEL_EMBED), jnp.float32)
    # text_out_transform weight stored in the kernel's (F, K) layout (== torch layout),
    # bias stored as a (F, 1) column for the lane-transposed head.
    p["tot_w"] = dense((F_DIM, N_KERNEL), N_KERNEL).astype(jnp.bfloat16)
    p["tot_b"] = 0.1 * jax.random.normal(nxt(), (F_DIM, 1), jnp.float32)

    p["gcn"] = {
        "w1": dense((LABEL_EMBED, GCN_HIDDEN), LABEL_EMBED),
        "b1": 0.1 * jax.random.normal(nxt(), (GCN_HIDDEN,), jnp.float32),
        "w2": dense((GCN_HIDDEN, GCN_OUT), GCN_HIDDEN),
        "b2": 0.1 * jax.random.normal(nxt(), (GCN_OUT,), jnp.float32),
    }
    return p


def build_graph(key):
    k1, k2 = jax.random.split(key)
    x = jax.random.normal(k1, (N_TOTAL, LABEL_EMBED), jnp.float32)     # G.x
    hier = jnp.arange(1, START, dtype=jnp.int32)                       # hierarchy nodes
    lab = jnp.arange(START, N_TOTAL, dtype=jnp.int32)                  # label nodes
    lab_parent = 1 + (lab - START) % (START - 1)
    root = jnp.zeros_like(hier)
    src = jnp.concatenate([root, hier, lab_parent, lab])
    dst = jnp.concatenate([hier, root, lab, lab_parent])
    edge_index = jnp.stack([src, dst])                                 # (2, E)
    edge_weight = 0.5 + jax.random.uniform(k2, (src.shape[0],), jnp.float32)   # G.edge_attr
    return x, edge_index, edge_weight


if __name__ == "__main__":
    key = jax.random.PRNGKey(0)
    kp, kg, ki = jax.random.split(key, 3)
    params = init_params(kp)
    graph = build_graph(kg)
    ids = jax.random.randint(ki, (B, L), 0, VOCAB, dtype=jnp.int32)
    mask = jnp.ones((B, L), jnp.int32)   # unused by the forward pass (signature parity)

    fwd = jax.jit(zagcnn_forward)
    logits = jax.block_until_ready(fwd(params, ids, mask, graph))
    assert logits.shape == (B, N_LABEL), logits.shape

    ref = ref_forward(params, ids, mask, graph)
    err = float(jnp.max(jnp.abs(logits - ref)))
    assert jnp.allclose(logits, ref, atol=2e-2, rtol=2e-2), err
    print("KERNEL_OK")
</pallas_src>

<mosaic_0001>
module attributes {stable_mosaic.version = 11 : i64} {
  func.func @zagcnn_text_kernel(%arg0: memref<48x1xi32, #tpu.memory_space<vmem>>, %arg1: memref<64x32xf32, #tpu.memory_space<vmem>>, %arg2: memref<96x32xbf16, #tpu.memory_space<vmem>>, %arg3: memref<1x32xf32, #tpu.memory_space<vmem>>, %arg4: memref<16x128xf32, #tpu.memory_space<vmem>>, %arg5: memref<32x16xbf16, #tpu.memory_space<vmem>>, %arg6: memref<1x16xf32, #tpu.memory_space<vmem>>, %arg7: memref<32x32xbf16, #tpu.memory_space<vmem>>, %arg8: memref<32x1xf32, #tpu.memory_space<vmem>>, %arg9: memref<32x128xf32, #tpu.memory_space<vmem>>, %arg10: memref<2x128xf32, #tpu.memory_space<vmem>>) attributes {dimension_semantics = [], scalar_prefetch = 0 : i64, scratch_operands = 0 : i64, tpu.core_type = #tpu.core_type<tc>} {
    %c0 = arith.constant 0 : index
    %c0_0 = arith.constant 0 : index
    %0 = vector.load %arg1[%c0, %c0_0] : memref<64x32xf32, #tpu.memory_space<vmem>>, vector<64x32xf32>
    %1 = arith.truncf %0 : vector<64x32xf32> to vector<64x32xbf16>
    %c0_1 = arith.constant 0 : index
    %c0_2 = arith.constant 0 : index
    %2 = vector.load %arg2[%c0_1, %c0_2] : memref<96x32xbf16, #tpu.memory_space<vmem>>, vector<96x32xbf16>
    %c0_3 = arith.constant 0 : index
    %c0_4 = arith.constant 0 : index
    %3 = vector.load %arg3[%c0_3, %c0_4] : memref<1x32xf32, #tpu.memory_space<vmem>>, vector<1x32xf32>
    %c0_5 = arith.constant 0 : index
    %c0_6 = arith.constant 0 : index
    %4 = vector.load %arg5[%c0_5, %c0_6] : memref<32x16xbf16, #tpu.memory_space<vmem>>, vector<32x16xbf16>
    %c0_7 = arith.constant 0 : index
    %c0_8 = arith.constant 0 : index
    %5 = vector.load %arg6[%c0_7, %c0_8] : memref<1x16xf32, #tpu.memory_space<vmem>>, vector<1x16xf32>
    %c0_9 = arith.constant 0 : index
    %c0_10 = arith.constant 0 : index
    %6 = vector.load %arg7[%c0_9, %c0_10] : memref<32x32xbf16, #tpu.memory_space<vmem>>, vector<32x32xbf16>
    %c0_11 = arith.constant 0 : index
    %c0_12 = arith.constant 0 : index
    %7 = vector.load %arg8[%c0_11, %c0_12] : memref<32x1xf32, #tpu.memory_space<vmem>>, vector<32x1xf32>
    %c0_13 = arith.constant 0 : index
    %c0_14 = arith.constant 0 : index
    %8 = vector.load %arg4[%c0_13, %c0_14] : memref<16x128xf32, #tpu.memory_space<vmem>>, vector<16x128xf32>
    %9 = arith.truncf %8 : vector<16x128xf32> to vector<16x128xbf16>
    %c0_15 = arith.constant 0 : index
    %c0_16 = arith.constant 0 : index
    %10 = vector.load %arg9[%c0_15, %c0_16] : memref<32x128xf32, #tpu.memory_space<vmem>>, vector<32x128xf32>
    %11 = tpu.iota {dimensions = array<i32: 1>} : vector<1x128xi32>
    %c10_i32 = arith.constant 10 : i32
    %12 = vector.broadcast %c10_i32 : i32 to vector<1x128xi32>
    %13 = arith.cmpi slt, %11, %12 : vector<1x128xi32>
    %cst = arith.constant 0.000000e+00 : f32
    %cst_17 = arith.constant -1.000000e+30 : f32
    %14 = vector.broadcast %cst : f32 to vector<1x128xf32>
    %15 = vector.broadcast %cst_17 : f32 to vector<1x128xf32>
    %16 = arith.select %13, %14, %15 : vector<1x128xi1>, vector<1x128xf32>
    %17 = tpu.iota {dimensions = array<i32: 1>} : vector<48x64xi32>
    %c0_18 = arith.constant 0 : index
    %c0_19 = arith.constant 0 : index
    %18 = vector.load %arg0[%c0_18, %c0_19] : memref<48x1xi32, #tpu.memory_space<vmem>>, vector<48x1xi32>
    %19 = vector.broadcast %18 : vector<48x1xi32> to vector<48x64xi32>
    %20 = arith.cmpi eq, %17, %19 : vector<48x64xi32>
    %21 = arith.extui %20 : vector<48x64xi1> to vector<48x64xi32>
    %22 = arith.sitofp %21 : vector<48x64xi32> to vector<48x64xf32>
    %23 = arith.truncf %22 : vector<48x64xf32> to vector<48x64xbf16>
    %cst_20 = arith.constant dense<0.000000e+00> : vector<48x32xf32>
    %24 = tpu.matmul %23, %1, %cst_20 {dimension_numbers = #tpu.dot_dimension_numbers<[1], [0], [0], [1], [0, 0, 1, 1], [], []>} : vector<48x64xbf16>, vector<64x32xbf16>, vector<48x32xf32> -> vector<48x32xf32>
    %25 = vector.extract_strided_slice %24 {offsets = [0, 0], sizes = [16, 32], strides = [1, 1]} : vector<48x32xf32> to vector<16x32xf32>
    %26 = arith.truncf %25 : vector<16x32xf32> to vector<16x32xbf16>
    %27 = vector.extract_strided_slice %2 {offsets = [0, 0], sizes = [32, 32], strides = [1, 1]} : vector<96x32xbf16> to vector<32x32xbf16>
    %cst_21 = arith.constant dense<0.000000e+00> : vector<16x32xf32>
    %28 = tpu.matmul %26, %27, %cst_21 {dimension_numbers = #tpu.dot_dimension_numbers<[1], [0], [0], [1], [0, 0, 1, 1], [], []>} : vector<16x32xbf16>, vector<32x32xbf16>, vector<16x32xf32> -> vector<16x32xf32>
    %29 = vector.broadcast %3 : vector<1x32xf32> to vector<16x32xf32>
    %30 = arith.addf %29, %28 : vector<16x32xf32>
    %31 = vector.extract_strided_slice %24 {offsets = [16, 0], sizes = [16, 32], strides = [1, 1]} : vector<48x32xf32> to vector<16x32xf32>
    %32 = arith.truncf %31 : vector<16x32xf32> to vector<16x32xbf16>
    %33 = vector.extract_strided_slice %2 {offsets = [32, 0], sizes = [32, 32], strides = [1, 1]} : vector<96x32xbf16> to vector<32x32xbf16>
    %cst_22 = arith.constant dense<0.000000e+00> : vector<16x32xf32>
    %34 = tpu.matmul %32, %33, %cst_22 {dimension_numbers = #tpu.dot_dimension_numbers<[1], [0], [0], [1], [0, 0, 1, 1], [], []>} : vector<16x32xbf16>, vector<32x32xbf16>, vector<16x32xf32> -> vector<16x32xf32>
    %35 = arith.addf %30, %34 : vector<16x32xf32>
    %36 = vector.extract_strided_slice %24 {offsets = [32, 0], sizes = [16, 32], strides = [1, 1]} : vector<48x32xf32> to vector<16x32xf32>
    %37 = arith.truncf %36 : vector<16x32xf32> to vector<16x32xbf16>
    %38 = vector.extract_strided_slice %2 {offsets = [64, 0], sizes = [32, 32], strides = [1, 1]} : vector<96x32xbf16> to vector<32x32xbf16>
    %cst_23 = arith.constant dense<0.000000e+00> : vector<16x32xf32>
    %39 = tpu.matmul %37, %38, %cst_23 {dimension_numbers = #tpu.dot_dimension_numbers<[1], [0], [0], [1], [0, 0, 1, 1], [], []>} : vector<16x32xbf16>, vector<32x32xbf16>, vector<16x32xf32> -> vector<16x32xf32>
    %40 = arith.addf %35, %39 : vector<16x32xf32>
    %cst_24 = arith.constant 0.000000e+00 : f32
    %41 = vector.broadcast %cst_24 : f32 to vector<16x32xf32>
    %42 = arith.maximumf %40, %41 : vector<16x32xf32>
    %43 = arith.truncf %42 : vector<16x32xf32> to vector<16x32xbf16>
    %cst_25 = arith.constant dense<0.000000e+00> : vector<16x16xf32>
    %44 = tpu.matmul %43, %4, %cst_25 {dimension_numbers = #tpu.dot_dimension_numbers<[1], [0], [0], [1], [0, 0, 1, 1], [], []>} : vector<16x32xbf16>, vector<32x16xbf16>, vector<16x16xf32> -> vector<16x16xf32>
    %45 = vector.broadcast %5 : vector<1x16xf32> to vector<16x16xf32>
    %46 = arith.addf %44, %45 : vector<16x16xf32>
    %47 = math.tanh %46 : vector<16x16xf32>
    %48 = arith.truncf %47 : vector<16x16xf32> to vector<16x16xbf16>
    %cst_26 = arith.constant dense<0.000000e+00> : vector<16x128xf32>
    %49 = tpu.matmul %48, %9, %cst_26 {dimension_numbers = #tpu.dot_dimension_numbers<[1], [0], [0], [1], [0, 0, 1, 1], [], []>} : vector<16x16xbf16>, vector<16x128xbf16>, vector<16x128xf32> -> vector<16x128xf32>
    %50 = vector.broadcast %16 : vector<1x128xf32> to vector<16x128xf32>
    %51 = arith.addf %49, %50 : vector<16x128xf32>
    %cst_27 = arith.constant dense<0xFF800000> : vector<16xf32>
    %52 = vector.multi_reduction <maximumf>, %51, %cst_27 [1] : vector<16x128xf32> to vector<16xf32>
    %53 = vector.shape_cast %52 : vector<16xf32> to vector<16x1xf32>
    %54 = vector.broadcast %53 : vector<16x1xf32> to vector<16x128xf32>
    %55 = arith.subf %51, %54 : vector<16x128xf32>
    %56 = math.exp %55 : vector<16x128xf32>
    %cst_28 = arith.constant dense<0.000000e+00> : vector<16xf32>
    %57 = vector.multi_reduction <add>, %56, %cst_28 [1] : vector<16x128xf32> to vector<16xf32>
    %58 = vector.shape_cast %57 : vector<16xf32> to vector<16x1xf32>
    %59 = tpu.reciprocal %58 {approx = true} : vector<16x1xf32> -> vector<16x1xf32>
    %60 = vector.broadcast %59 : vector<16x1xf32> to vector<16x128xf32>
    %61 = arith.mulf %56, %60 : vector<16x128xf32>
    %62 = vector.extract_strided_slice %42 {offsets = [0, 0], sizes = [8, 32], strides = [1, 1]} : vector<16x32xf32> to vector<8x32xf32>
    %63 = arith.truncf %62 : vector<8x32xf32> to vector<8x32xbf16>
    %64 = vector.extract_strided_slice %61 {offsets = [0, 0], sizes = [8, 128], strides = [1, 1]} : vector<16x128xf32> to vector<8x128xf32>
    %65 = arith.truncf %64 : vector<8x128xf32> to vector<8x128xbf16>
    %cst_29 = arith.constant dense<0.000000e+00> : vector<32x128xf32>
    %66 = tpu.matmul %63, %65, %cst_29 {dimension_numbers = #tpu.dot_dimension_numbers<[0], [0], [1], [1], [0, 1, 1, 1], [], []>} : vector<8x32xbf16>, vector<8x128xbf16>, vector<32x128xf32> -> vector<32x128xf32>
    %67 = vector.extract_strided_slice %42 {offsets = [8, 0], sizes = [8, 32], strides = [1, 1]} : vector<16x32xf32> to vector<8x32xf32>
    %68 = arith.truncf %67 : vector<8x32xf32> to vector<8x32xbf16>
    %69 = vector.extract_strided_slice %61 {offsets = [8, 0], sizes = [8, 128], strides = [1, 1]} : vector<16x128xf32> to vector<8x128xf32>
    %70 = arith.truncf %69 : vector<8x128xf32> to vector<8x128xbf16>
    %cst_30 = arith.constant dense<0.000000e+00> : vector<32x128xf32>
    %71 = tpu.matmul %68, %70, %cst_30 {dimension_numbers = #tpu.dot_dimension_numbers<[0], [0], [1], [1], [0, 1, 1, 1], [], []>} : vector<8x32xbf16>, vector<8x128xbf16>, vector<32x128xf32> -> vector<32x128xf32>
    %72 = tpu.concatenate %66, %71 in 1 : vector<32x128xf32>, vector<32x128xf32> -> vector<32x256xf32>
    %73 = arith.truncf %72 : vector<32x256xf32> to vector<32x256xbf16>
    %cst_31 = arith.constant dense<0.000000e+00> : vector<32x256xf32>
    %74 = tpu.matmul %6, %73, %cst_31 {dimension_numbers = #tpu.dot_dimension_numbers<[1], [0], [0], [1], [0, 0, 1, 1], [], []>} : vector<32x32xbf16>, vector<32x256xbf16>, vector<32x256xf32> -> vector<32x256xf32>
    %75 = vector.broadcast %7 : vector<32x1xf32> to vector<32x256xf32>
    %76 = arith.addf %74, %75 : vector<32x256xf32>
    %cst_32 = arith.constant 0.000000e+00 : f32
    %77 = vector.broadcast %cst_32 : f32 to vector<32x256xf32>
    %78 = arith.maximumf %76, %77 : vector<32x256xf32>
    %79 = vector.extract_strided_slice %78 {offsets = [0, 0], sizes = [32, 128], strides = [1, 1]} : vector<32x256xf32> to vector<32x128xf32>
    %80 = arith.mulf %79, %10 : vector<32x128xf32>
    %cst_33 = arith.constant dense<0.000000e+00> : vector<128xf32>
    %81 = vector.multi_reduction <add>, %80, %cst_33 [0] : vector<32x128xf32> to vector<128xf32>
    %82 = vector.shape_cast %81 : vector<128xf32> to vector<1x128xf32>
    %c0_34 = arith.constant 0 : index
    %c0_35 = arith.constant 0 : index
    %83 = vector.load %arg10[%c0_34, %c0_35] : memref<2x128xf32, #tpu.memory_space<vmem>>, vector<1x128xf32>
    tpu.vector_store %arg10[%c0_34, %c0_35], %82 {strides = array<i32>} : memref<2x128xf32, #tpu.memory_space<vmem>>, vector<1x128xf32>,
    %84 = vector.extract_strided_slice %78 {offsets = [0, 128], sizes = [32, 128], strides = [1, 1]} : vector<32x256xf32> to vector<32x128xf32>
    %85 = arith.mulf %84, %10 : vector<32x128xf32>
    %cst_36 = arith.constant dense<0.000000e+00> : vector<128xf32>
    %86 = vector.multi_reduction <add>, %85, %cst_36 [0] : vector<32x128xf32> to vector<128xf32>
    %87 = vector.shape_cast %86 : vector<128xf32> to vector<1x128xf32>
    %c1 = arith.constant 1 : index
    %c0_37 = arith.constant 0 : index
    %88 = vector.load %arg10[%c1, %c0_37] : memref<2x128xf32, #tpu.memory_space<vmem>>, vector<1x128xf32>
    tpu.vector_store %arg10[%c1, %c0_37], %87 {strides = array<i32>} : memref<2x128xf32, #tpu.memory_space<vmem>>, vector<1x128xf32>,
    return
  }
}

</mosaic_0001>

<bundles_post_ra>
// kernel: zagcnn_forward.1
= control target key start
LH: loop header
LB: loop body
LE: loop exit
PB: predicated region body
PF: predicated region fallthrough
CT: control target
= control target key end

     0   :  { %v687_v2 = vmov 0   ;;  %s877_s0 = inlined_call_operand.vmem [shape: s32[48,1], index: 0, kind: input, shape index: {}]   ;;  %s878_s1 = inlined_call_operand.vmem [shape: f32[64,32], index: 1, kind: input, shape index: {}]   ;;  %s879_s2 = inlined_call_operand.vmem [shape: bf16[96,32], index: 2, kind: input, shape index: {}]   ;;  %s880_s3 = inlined_call_operand.vmem [shape: f32[1,32], index: 3, kind: input, shape index: {}]   ;;  %s881_s4 = inlined_call_operand.vmem [shape: f32[16,128], index: 4, kind: input, shape index: {}]   ;;  %s882_s5 = inlined_call_operand.vmem [shape: bf16[32,16], index: 5, kind: input, shape index: {}]   ;;  %s883_s6 = inlined_call_operand.vmem [shape: f32[1,16], index: 6, kind: input, shape index: {}]   ;;  %s884_s7 = inlined_call_operand.vmem [shape: bf16[32,32], index: 7, kind: input, shape index: {}]   ;;  %s885_s8 = inlined_call_operand.vmem [shape: f32[32,1], index: 8, kind: input, shape index: {}]   ;;  %s886_s9 = inlined_call_operand.vmem [shape: f32[32,128], index: 9, kind: input, shape index: {}]   ;;  %s887_s10 = inlined_call_operand.hbm [shape: f32[2,128], index: 10, kind: output, shape index: {}]  }
   0x1   :  { %v86_v0 = vld [vmem:[%s877_s0] sm:$0xff]  ;;  %v88_v1 = vld [vmem:[%s877_s0 + $0x10] sm:$0xff]  ;;  %639 = vset.pattern.permute.xlu0 %v687_v2  ;;  %640 = vset.pattern.permute.xlu1 %v687_v2  ;;  %v44_v5 = vld [vmem:[%s878_s1 + $0x38] sm:$0xff] }
   0x2   :  { %v90_v3 = vld [vmem:[%s877_s0 + $0x20] sm:$0xff]  ;;  %93 = vperm.xlu0 %639, %v86_v0   ;;  %99 = vperm.xlu1 %640, %v88_v1   ;;  %v43_v4 = vld [vmem:[%s878_s1 + $0x30] sm:$0xff] }
   0x3   :  { %641 = vset.pattern.permute.xlu2 %v687_v2  ;;  %v48_v6 = vpack.c.bf16 %v44_v5, %v43_v4 }
   0x4   :  { %15 = vsyncpa [#allocation3], 0  ;;  %105 = vperm.xlu2 %641, %v90_v3   ;;  %v87_v7 = vld [vmem:[%s877_s0 + $0x8] sm:$0xff]  ;;  %v89_v8 = vld [vmem:[%s877_s0 + $0x18] sm:$0xff]  ;;  %v82_v19 = vlaneseq  ;;  %v688_v24 = vmov 0.0   ;;  %vm131_vm2 = vcmask 523264  }
   0x5   :  { %145 = vmatpush.bf16.msra.mxu0 %v48_v6  ;;  %v91_v9 = vld [vmem:[%s877_s0 + $0x28] sm:$0xff]  ;;  %v41_v10 = vld [vmem:[%s878_s1 + $0x20] sm:$0xff]  ;;  %v39_v13 = vld [vmem:[%s878_s1 + $0x10] sm:$0xff]  ;;  %vm178_vm7 = vcmask 261120   ;;  %vm303_vm8 = vcmask 130048   ;;  %vm364_vm10 = vcmask 1043456  }
   0x6   :  { %v42_v11 = vld [vmem:[%s878_s1 + $0x28] sm:$0xff]  ;;  %v40_v14 = vld [vmem:[%s878_s1 + $0x18] sm:$0xff]  ;;  %v37_v16 = vld [vmem:[%s878_s1] sm:$0xff]  ;;  %v788_v21 = vand.u32 127, %v82_v19  ;;  %vm357_vm11 = vcmask 64512  }
   0x7   :  { %v47_v12 = vpack.c.bf16 %v42_v11, %v41_v10  ;;  %v46_v15 = vpack.c.bf16 %v40_v14, %v39_v13  ;;  %v38_v17 = vld [vmem:[%s878_s1 + $0x8] sm:$0xff]  ;;  %v625_v38 = vld [vmem:[%s879_s2] sm:$0xff]  ;;  %v628_v39 = vld [vmem:[%s879_s2 + $0x18] sm:$0xff] }
   0x8   :  { %v45_v18 = vpack.c.bf16 %v38_v17, %v37_v16  ;;  %v626_v37 = vld [vmem:[%s879_s2 + $0x8] sm:$0xff]  ;;  %223 = vmatpush.bf16.msra.mxu2 %v628_v39  ;;  %v627_v41 = vld [vmem:[%s879_s2 + $0x10] sm:$0xff]  ;;  %v629_v43 = vld [vmem:[%s879_s2 + $0x20] sm:$0xff]  ;;  %vm84_vm9 = vcmp.lt.s32.totalorder %v788_v21, 10  ;;  %v689_v17 = vmov -1e+30  }
   0x9   :  { %146 = vmatpush.bf16.msra.mxu0 %v47_v12  ;;  %188 = vmatpush.bf16.msra.mxu1 %v626_v37  ;;  %v630_v40 = vld [vmem:[%s879_s2 + $0x28] sm:$0xff]  ;;  %v631_v53 = vld [vmem:[%s882_s5] sm:$0xff] }
   0xa   :  { %96 = vperm.xlu0 %639, %v87_v7   ;;  %102 = vperm.xlu1 %640, %v89_v8   ;;  %v632_v52 = vld [vmem:[%s882_s5 + $0x8] sm:$0xff]  ;;  %v647_v56 = vld [vmem:[%s880_s3] ss:$0 sm:$0xff]  ;;  %s554_s5 = sshll.u32 %s887_s10, 4  ;;  %s555_s5 = int_to_ptr.hbm [resolvable:$true] %s554_s5 }
   0xb   :  { %v75_v6 = vld [vmem:[%s881_s4] sm:$0xff]  ;;  %v76_v7 = vld [vmem:[%s881_s4 + $0x8] sm:$0xff] }
   0xc   :  { %108 = vperm.xlu2 %641, %v91_v9   ;;  %224 = vmatpush.bf16.msra.mxu2 %v627_v41  ;;  %v77_v8 = vpack.c.bf16 %v76_v7, %v75_v6  ;;  %v648_v10 = vld [vmem:[%s883_s6] ss:$0 sm:$0xff] }
   0xd   :  { %147 = vmatpush.bf16.msra.mxu0 %v46_v15  ;;  %189 = vmatpush.bf16.msra.mxu1 %v625_v38 }
  0x10   :  { %314 = vmatpush.bf16.msrb.mxu2 %v77_v8 }
  0x11   :  { %148 = vmatpush.bf16.msra.mxu0 %v45_v18  ;;  %292 = vmatpush.bf16.msrb.mxu1 %v632_v52  ;;  %v85_v18 = vsel %vm84_vm9, 0.0, %v689_v17  ;;  %v79_v17 = vld [vmem:[%s886_s9 + $0x8] sm:$0xff] }
  0x15   :  { %255 = vmatpush.bf16.msrb.mxu0 %v630_v40  ;;  %293 = vmatpush.bf16.msrb.mxu1 %v631_v53 }
  0x19   :  { %256 = vmatpush.bf16.msrb.mxu0 %v629_v43 }
  0x5e   :  { %v106_v31 = vpop.permute.xlu2 %105 }
  0x5f   :  { %vm114_vm5 = vcmp.eq.s32.totalorder %v788_v21, %v106_v31 }
  0x60   :  { %v567_v34 = vsel %vm114_vm5, 1.0, %v688_v24 }
  0x66   :  { %v109_v33 = vpop.permute.xlu2 %108 }
  0x67   :  { %vm115_vm6 = vcmp.eq.s32.totalorder %v788_v21, %v109_v33 }
  0x68   :  { %v568_v35 = vsel %vm115_vm6, 1.0, %v688_v24 }
  0x69   :  { %v130_v36 = vpack.c.bf16 %v568_v35, %v567_v34  ;;  %v72_v35 = vld [vmem:[%s885_s8 + $0x8] sm:$0xff] }
  0x74   :  { %v94_v20 = vpop.permute.xlu0 %93  ;;  %v100_v22 = vpop.permute.xlu1 %99 }
  0x75   :  { %vm110_vm0 = vcmp.eq.s32.totalorder %v788_v21, %v94_v20  ;;  %vm112_vm3 = vcmp.eq.s32.totalorder %v788_v21, %v100_v22 }
  0x76   :  { %v563_v25 = vsel %vm110_vm0, 1.0, %v688_v24  ;;  %v565_v29 = vsel %vm112_vm3, 1.0, %v688_v24 }
  0x7c   :  { %v97_v23 = vpop.permute.xlu0 %96  ;;  %v103_v28 = vpop.permute.xlu1 %102 }
  0x7d   :  { %vm111_vm1 = vcmp.eq.s32.totalorder %v788_v21, %v97_v23  ;;  %vm113_vm4 = vcmp.eq.s32.totalorder %v788_v21, %v103_v28 }
  0x7e   :  { %v564_v26 = vsel %vm111_vm1, 1.0, %v688_v24  ;;  %v566_v30 = vsel %vm113_vm4, 1.0, %v688_v24  ;;  %v71_v24 = vld [vmem:[%s885_s8] sm:$0xff] }
  0x7f   :  { %v128_v27 = vpack.c.bf16 %v564_v26, %v563_v25  ;;  %v129_v32 = vpack.c.bf16 %v566_v30, %v565_v29  ;;  %v73_v25 = vld [vmem:[%s885_s8 + $0x10] sm:$0xff] }
  0x81   :  { %569 = vmatmul.msk.bf16.vlgmr.msra.gmra.mxu0 %vm131_vm2, %v128_v27 }
  0x91   :  { %570 = vmatmul.msk.bf16.gmra.mxu0 %vm131_vm2, %v129_v32 }
  0xa1   :  { %571 = vmatmul.msk.bf16.gmra.mxu0 %vm131_vm2, %v130_v36  ;;  %v74_v36 = vld [vmem:[%s885_s8 + $0x18] sm:$0xff] }
  0xfe   :  { %v150_v42 = vpop.f32.mrf.mxu0 }
 0x106   :  { %v152_v44 = vpop.f32.mrf.mxu0 }
 0x107   :  { %v165_v45 = vpack.c.bf16 %v152_v44, %v150_v42 }
 0x109   :  { %580 = vmatmul.msk.bf16.vlgmr.msra.gmra.mxu1 %vm178_vm7, %v165_v45 }
 0x10e   :  { %v155_v46 = vpop.f32.mrf.mxu0 }
 0x116   :  { %v157_v47 = vpop.f32.mrf.mxu0 }
 0x117   :  { %v201_v48 = vpack.c.bf16 %v157_v47, %v155_v46 }
 0x119   :  { %589 = vmatmul.msk.bf16.vlgmr.msra.gmra.mxu2 %vm178_vm7, %v201_v48 }
 0x11e   :  { %v160_v49 = vpop.f32.mrf.mxu0 }
 0x126   :  { %v162_v50 = vpop.f32.mrf.mxu0 }
 0x127   :  { %v233_v51 = vpack.c.bf16 %v162_v50, %v160_v49 }
 0x129   :  { %598 = vmatmul.msk.bf16.vlgmr.msrb.gmra.mxu0 %vm178_vm7, %v233_v51 }
 0x186   :  { %v191_v54 = vpop.f32.mrf.mxu1 }
 0x187   :  { %v199_v59 = vadd.f32 %v647_v56, %v191_v54 }
 0x18e   :  { %v193_v58 = vpop.f32.mrf.mxu1 }
 0x18f   :  { %v200_v61 = vadd.f32 %v647_v56, %v193_v58 }
 0x19c   :  { %v226_v55 = vpop.f32.mrf.mxu2 }
 0x19d   :  { %v231_v62 = vadd.f32 %v226_v55, %v199_v59 }
 0x1a4   :  { %v228_v60 = vpop.f32.mrf.mxu2 }
 0x1a5   :  { %v232_v63 = vadd.f32 %v228_v60, %v200_v61 }
 0x1a6   :  { %v258_v57 = vpop.f32.mrf.mxu0 }
 0x1a7   :  { %v263_v0 = vadd.f32 %v258_v57, %v231_v62  ;;  %v633_v62 = vld [vmem:[%s884_s7] sm:$0xff] }
 0x1a9   :  { %v265_v3 = vmax.f32 %v263_v0, 0.0  ;;  %v634_v0 = vld [vmem:[%s884_s7 + $0x8] sm:$0xff] }
 0x1ab   :  { %v339_v26 = vpack.c.bf16 %v265_v3, %v265_v3 }
 0x1ae   :  { %v260_v1 = vpop.f32.mrf.mxu0 }
 0x1af   :  { %v264_v2 = vadd.f32 %v260_v1, %v232_v63 }
 0x1b1   :  { %v266_v4 = vmax.f32 %v264_v2, 0.0 }
 0x1b3   :  { %v267_v5 = vpack.c.bf16 %v266_v4, %v265_v3  ;;  %v387_v27 = vpack.c.bf16 %v266_v4, %v266_v4 }
 0x1b5   :  { %607 = vmatmul.msk.bf16.vlgmr.msrb.gmra.mxu1 %vm178_vm7, %v267_v5 }
 0x232   :  { %v295_v9 = vpop.f32.mrf.mxu1 }
 0x233   :  { %v296_v11 = vadd.f32 %v648_v10, %v295_v9 }
 0x235   :  { %649 = vtanh.f32 %v296_v11 }
 0x23a   :  { %v297_v12 = vpop.f32.mrf.mxu1 }
 0x23b   :  { %v298_v13 = vadd.f32 %v648_v10, %v297_v12  ;;  %v650_v14 = vpop.eup %649 }
 0x23d   :  { %651 = vtanh.f32 %v298_v13 }
 0x243   :  { %v652_v15 = vpop.eup %651 }
 0x244   :  { %v302_v16 = vpack.c.bf16 %v652_v15, %v650_v14 }
 0x246   :  { %608 = vmatmul.msk.bf16.vlgmr.msrb.gmra.mxu2 %vm303_vm8, %v302_v16 }
 0x2c9   :  { %v316_v19 = vpop.f32.mrf.mxu2 }
 0x2ca   :  { %v317_v20 = vadd.f32 %v316_v19, %v85_v18 }
 0x2cc   :  { %321 = vmax.xlane.f32.xlu0 %v317_v20 }
 0x2d1   :  { %v318_v22 = vpop.f32.mrf.mxu2 }
 0x2d2   :  { %v319_v23 = vadd.f32 %v318_v22, %v85_v18  ;;  %v78_v22 = vld [vmem:[%s886_s9] sm:$0xff] }
 0x2d4   :  { %323 = vmax.xlane.f32.xlu1 %v319_v23 }
 0x2ed   :  { %439 = vperm.xlu1 %640, %v71_v24   ;;  %v80_v24 = vld [vmem:[%s886_s9 + $0x10] sm:$0xff] }
 0x2f5   :  { %449 = vperm.xlu1 %640, %v73_v25  }
 0x2f6   :  { %642 = vxpose.binary.xlu0.c.b16.start.end [1/2] (short) (narrow) %v387_v27, %v339_v26, 32 }
 0x33f   :  { %v322_v21 = vpop.xlane.xlu0 %321 }
 0x340   :  { %v325_v28 = vsub.f32 %v317_v20, %v322_v21 }
 0x342   :  { %v327_v29 = vmul.f32 1.442695, %v325_v28 }
 0x344   :  { %653 = vpow2.f32 %v327_v29 }
 0x347   :  { %v324_v30 = vpop.xlane.xlu1 %323 }
 0x348   :  { %v326_v31 = vsub.f32 %v319_v23, %v324_v30 }
 0x34a   :  { %v654_v32 = vpop.eup %653  ;;  %v329_v33 = vmul.f32 1.442695, %v326_v31 }
 0x34b   :  { %331 = vadd.xlane.f32.xlu2 %v654_v32 }
 0x34c   :  { %655 = vpow2.f32 %v329_v33  ;;  %v81_v33 = vld [vmem:[%s886_s9 + $0x18] sm:$0xff]  ;;  %s690_s9 = smov [#allocation2]  }
 0x34d   :  { %s552_s13 = sshll.u32 %s690_s9, 4  ;;  %s553_s13 = int_to_ptr.vmem [resolvable:$true] %s552_s13 }
 0x352   :  { %v656_v34 = vpop.eup %655 }
 0x353   :  { %333 = vadd.xlane.f32.xlu2 %v656_v34 }
 0x35f   :  { %v440_v3 = vpop.permute.xlu1 %439 }
 0x367   :  { %v450_v8 = vpop.permute.xlu1 %449 }
 0x36b   :  { %444 = vperm.xlu2 %641, %v72_v35  }
 0x373   :  { %454 = vperm.xlu2 %641, %v74_v36  }
 0x3a2   :  { %v643_v39 = vpop.trf.xlu0 }
 0x3aa   :  { %v644_v46 = vpop.trf.xlu0 }
 0x3b2   :  { %v645_v49 = vpop.trf.xlu0 }
 0x3ba   :  { %v646_v50 = vpop.trf.xlu0 }
 0x3be   :  { %v332_v37 = vpop.xlane.xlu2 %331 }
 0x3bf   :  { %657 = vrcp.f32 %v332_v37 }
 0x3c5   :  { %v658_v38 = vpop.eup %657 }
 0x3c6   :  { %v334_v40 = vpop.xlane.xlu2 %333  ;;  %v337_v41 = vmul.f32 %v658_v38, %v654_v32 }
 0x3c7   :  { %659 = vrcp.f32 %v334_v40 }
 0x3c8   :  { %v340_v42 = vpack.c.bf16 %v337_v41, %v337_v41 }
 0x3ca   :  { %v366_v43 = vsel %vm364_vm10, %v340_v42, 0 }
 0x3cb   :  { %375 = vmatpush.bf16.msra.mxu3 %v366_v43 }
 0x3cd   :  { %v660_v44 = vpop.eup %659 }
 0x3ce   :  { %v338_v45 = vmul.f32 %v660_v44, %v656_v34  ;;  %609 = vmatmul.msk.bf16.vlgmr.msra.gmra.mxu3 %vm357_vm11, %v643_v39  ;;  %v445_v6 = vpop.permute.xlu2 %444 }
 0x3d0   :  { %v388_v47 = vpack.c.bf16 %v338_v45, %v338_v45 }
 0x3d2   :  { %v412_v48 = vsel %vm364_vm10, %v388_v47, 0 }
 0x3d3   :  { %421 = vmatpush.bf16.msra.mxu1 %v412_v48 }
 0x3d6   :  { %611 = vmatmul.msk.bf16.vlgmr.msra.gmra.mxu1 %vm357_vm11, %v644_v46  ;;  %v455_v27 = vpop.permute.xlu2 %454 }
 0x3de   :  { %610 = vmatmul.msk.bf16.gmra.mxu3 %vm357_vm11, %v645_v49 }
 0x3e6   :  { %612 = vmatmul.msk.bf16.gmra.mxu1 %vm357_vm11, %v646_v50 }
 0x451   :  { %v377_v51 = vpop.f32.mrf.mxu3 }
 0x453   :  { %v423_v52 = vpop.f32.mrf.mxu1 }
 0x459   :  { %v379_v53 = vpop.f32.mrf.mxu3 }
 0x45a   :  { %v433_v61 = vpack.c.bf16 %v379_v53, %v377_v51 }
 0x45b   :  { %v425_v54 = vpop.f32.mrf.mxu1 }
 0x45c   :  { %v434_v63 = vpack.c.bf16 %v425_v54, %v423_v52 }
 0x461   :  { %v382_v55 = vpop.f32.mrf.mxu3 }
 0x463   :  { %v428_v56 = vpop.f32.mrf.mxu1 }
 0x469   :  { %v384_v57 = vpop.f32.mrf.mxu3 }
 0x46a   :  { %v435_v58 = vpack.c.bf16 %v384_v57, %v382_v55 }
 0x46b   :  { %v430_v59 = vpop.f32.mrf.mxu1 }
 0x46c   :  { %v436_v60 = vpack.c.bf16 %v430_v59, %v428_v56  ;;  %479 = vmatpush.bf16.msra.mxu2 %v435_v58 }
 0x46e   :  { %498 = vmatpush.bf16.msrb.mxu3 %v436_v60 }
 0x470   :  { %480 = vmatpush.bf16.msra.mxu2 %v433_v61 }
 0x472   :  { %499 = vmatpush.bf16.msrb.mxu3 %v434_v63 }
 0x473   :  { %621 = vmatmul.msk.bf16.vlgmr.msra.gmra.mxu2 %vm178_vm7, %v633_v62 }
 0x475   :  { %623 = vmatmul.msk.bf16.vlgmr.msrb.gmra.mxu3 %vm178_vm7, %v633_v62 }
 0x483   :  { %622 = vmatmul.msk.bf16.gmra.mxu2 %vm178_vm7, %v634_v0 }
 0x485   :  { %624 = vmatmul.msk.bf16.gmra.mxu3 %vm178_vm7, %v634_v0 }
 0x4f6   :  { %v482_v1 = vpop.f32.mrf.mxu2 }
 0x4f7   :  { %v483_v10 = vadd.f32 %v482_v1, %v440_v3 }
 0x4f8   :  { %v501_v2 = vpop.f32.mrf.mxu3 }
 0x4f9   :  { %v502_v13 = vadd.f32 %v501_v2, %v440_v3  ;;  %v511_v18 = vmax.f32 %v483_v10, 0.0 }
 0x4fb   :  { %v512_v23 = vmax.f32 %v502_v13, 0.0  ;;  %v519_v28 = vmul.f32 %v511_v18, %v78_v22 }
 0x4fd   :  { %v533_v32 = vmul.f32 %v512_v23, %v78_v22 }
 0x4fe   :  { %v484_v4 = vpop.f32.mrf.mxu2 }
 0x4ff   :  { %v485_v7 = vadd.f32 %v484_v4, %v445_v6 }
 0x500   :  { %v503_v5 = vpop.f32.mrf.mxu3 }
 0x501   :  { %v504_v11 = vadd.f32 %v503_v5, %v445_v6  ;;  %v513_v15 = vmax.f32 %v485_v7, 0.0 }
 0x503   :  { %v514_v19 = vmax.f32 %v504_v11, 0.0  ;;  %v520_v25 = vmul.f32 %v513_v15, %v79_v17 }
 0x505   :  { %v534_v29 = vmul.f32 %v514_v19, %v79_v17  ;;  %v523_v35 = vadd.f32 %v520_v25, %v519_v28 }
 0x506   :  { %v487_v9 = vpop.f32.mrf.mxu2 }
 0x507   :  { %v488_v12 = vadd.f32 %v487_v9, %v450_v8  ;;  %v537_v39 = vadd.f32 %v534_v29, %v533_v32 }
 0x508   :  { %v506_v14 = vpop.f32.mrf.mxu3 }
 0x509   :  { %v507_v16 = vadd.f32 %v506_v14, %v450_v8  ;;  %v515_v20 = vmax.f32 %v488_v12, 0.0 }
 0x50b   :  { %v516_v26 = vmax.f32 %v507_v16, 0.0  ;;  %v521_v30 = vmul.f32 %v515_v20, %v80_v24 }
 0x50d   :  { %v535_v36 = vmul.f32 %v516_v26, %v80_v24  ;;  %v524_v40 = vadd.f32 %v523_v35, %v521_v30 }
 0x50e   :  { %v489_v21 = vpop.f32.mrf.mxu2 }
 0x50f   :  { %v490_v31 = vadd.f32 %v489_v21, %v455_v27  ;;  %v538_v43 = vadd.f32 %v537_v39, %v535_v36 }
 0x510   :  { %v508_v34 = vpop.f32.mrf.mxu3 }
 0x511   :  { %v517_v37 = vmax.f32 %v490_v31, 0.0  ;;  %v509_v38 = vadd.f32 %v508_v34, %v455_v27 }
 0x513   :  { %v522_v41 = vmul.f32 %v517_v37, %v81_v33  ;;  %v518_v42 = vmax.f32 %v509_v38, 0.0 }
 0x515   :  { %v525_v44 = vadd.f32 %v524_v40, %v522_v41  ;;  %v536_v45 = vmul.f32 %v518_v42, %v81_v33 }
 0x517   :  { %v526_v46 = vrot.slane %v525_v44, 4  ;;  %v539_v47 = vadd.f32 %v538_v43, %v536_v45 }
 0x519   :  { %v527_v48 = vadd.f32 %v526_v46, %v525_v44  ;;  %v540_v49 = vrot.slane %v539_v47, 4 }
 0x51b   :  { %v528_v50 = vrot.slane %v527_v48, 2  ;;  %v541_v51 = vadd.f32 %v540_v49, %v539_v47 }
 0x51d   :  { %v542_v52 = vrot.slane %v541_v51, 2  ;;  %v529_v53 = vadd.f32 %v528_v50, %v527_v48 }
 0x51f   :  { %v530_v54 = vrot.slane %v529_v53, 1  ;;  %v543_v55 = vadd.f32 %v542_v52, %v541_v51 }
 0x521   :  { %v531_v56 = vadd.f32 %v530_v54, %v529_v53  ;;  %v544_v57 = vrot.slane %v543_v55, 1 }
 0x523   :  { %532 = vst [vmem:[#allocation2] sm:$0x1] %v531_v56  ;;  %v545_v58 = vadd.f32 %v544_v57, %v543_v55 }
 0x525   :  { %546 = vst [vmem:[#allocation2 + $0x1] sm:$0x1] %v545_v58 }
 0x526   :  { %557 = dma.vmem_to_hbm [thread:$0]  %s553_s13, 32, %s555_s5, [#allocation3]  }
 0x527   :  { %685 = dma.done.wait [#allocation3], 32  }
 0x528   :  { %686 = vsyncadd [#allocation3], 4294967264 }
 0x529   :  { %562 = vsyncpa [#allocation3], 1 }

</bundles_post_ra>
